<compile_context>
chip_gen: v5e
topology: v5e:2x2
jax: 0.10.0
libtpu: 0.0.40
codegen_flags: <defaults>
</compile_context>

<pallas_src>
import jax
import jax.numpy as jnp
from jax.experimental import pallas as pl
from jax.experimental.pallas import tpu as pltpu

MID_DIM = 500     # input feature width of the classifier
N_CLASSES = 10
TB_MAX = 512      # max batch rows per grid step


def classifier_kernel(x_ref, w_ref, b_ref, out_ref):
    # ReLU; Dropout == identity in eval mode.
    h = jnp.maximum(x_ref[...], 0.0)
    # Linear(500, 10): MXU matmul with f32 accumulation, bias broadcast-add.
    y = jnp.dot(h, w_ref[...], preferred_element_type=jnp.float32)
    out_ref[...] = (y + b_ref[...]).astype(out_ref.dtype)


def lenet_classifier(feat, w, b):
    """feat: (B, 500).  w: (500, 10) (transposed vs PyTorch fc2.weight).  b: (10,)."""
    B, D = feat.shape
    assert D == MID_DIM, D

    # Batch tile: whole batch if it fits in one block (full-dim block is always
    # layout-legal), otherwise 512-row blocks (multiple of 8 sublanes) with a
    # masked partial trailing block.
    tb = B if B <= TB_MAX else TB_MAX
    grid = (pl.cdiv(B, tb),)

    b2 = b.reshape(1, N_CLASSES)

    out = pl.pallas_call(
        classifier_kernel,
        out_shape=jax.ShapeDtypeStruct((B, N_CLASSES), feat.dtype),
        grid_spec=pltpu.PrefetchScalarGridSpec(
            num_scalar_prefetch=0,
            grid=grid,
            in_specs=[
                pl.BlockSpec((tb, MID_DIM), lambda i: (i, 0)),          # feat tile
                pl.BlockSpec((MID_DIM, N_CLASSES), lambda i: (0, 0)),   # W (VMEM-resident)
                pl.BlockSpec((1, N_CLASSES), lambda i: (0, 0)),         # b (VMEM-resident)
            ],
            out_specs=pl.BlockSpec((tb, N_CLASSES), lambda i: (i, 0)),
        ),
        compiler_params=pltpu.CompilerParams(
            dimension_semantics=("parallel",),   # batch tiles are independent
            vmem_limit_bytes=8 << 20,            # ~2.1 MiB actual footprint
        ),
    )(feat, w, b2)
    return out


def reference(feat, w, b):
    h = jnp.maximum(feat, 0.0)           # Dropout == identity in eval mode
    return h @ w + b


if __name__ == "__main__":
    key = jax.random.PRNGKey(0)
    kx, kw, kb = jax.random.split(key, 3)

    B = 4  # small batch
    feat = jax.random.normal(kx, (B, MID_DIM), dtype=jnp.float32)

    # PyTorch-style init: uniform(-1/sqrt(fan_in), 1/sqrt(fan_in)), fan_in=500.
    bound = 1.0 / (MID_DIM ** 0.5)
    w = jax.random.uniform(kw, (MID_DIM, N_CLASSES), jnp.float32, -bound, bound)
    b = jax.random.uniform(kb, (N_CLASSES,), jnp.float32, -bound, bound)

    out = jax.block_until_ready(lenet_classifier(feat, w, b))
    ref = reference(feat, w, b)

    assert out.shape == (B, N_CLASSES), out.shape
    assert jnp.allclose(out, ref, atol=1e-4, rtol=1e-4), float(
        jnp.max(jnp.abs(out - ref))
    )
    print("KERNEL_OK")
</pallas_src>

<mosaic_0001>
module attributes {stable_mosaic.version = 11 : i64} {
  func.func @classifier_kernel(%arg0: i32, %arg1: memref<4x500xf32, #tpu.memory_space<vmem>>, %arg2: memref<500x10xf32, #tpu.memory_space<vmem>>, %arg3: memref<1x10xf32, #tpu.memory_space<vmem>>, %arg4: memref<4x10xf32, #tpu.memory_space<vmem>>) attributes {dimension_semantics = [#tpu.dimension_semantics<parallel>], iteration_bounds = array<i64: 1>, scalar_prefetch = 0 : i64, scratch_operands = 0 : i64, tpu.core_type = #tpu.core_type<tc>, window_params = [{transform_indices = @transform_0, window_bounds = array<i64: 4, 500>}, {pipeline_mode = #tpu.pipeline_mode<synchronous>, transform_indices = @transform_1, window_bounds = array<i64: 500, 10>}, {pipeline_mode = #tpu.pipeline_mode<synchronous>, transform_indices = @transform_2, window_bounds = array<i64: 1, 10>}, {transform_indices = @transform_3, window_bounds = array<i64: 4, 10>}]} {
    %c0 = arith.constant 0 : index
    %c0_0 = arith.constant 0 : index
    %0 = vector.load %arg1[%c0, %c0_0] : memref<4x500xf32, #tpu.memory_space<vmem>>, vector<4x500xf32>
    %cst = arith.constant 0.000000e+00 : f32
    %1 = vector.broadcast %cst : f32 to vector<4x500xf32>
    %2 = arith.maximumf %0, %1 : vector<4x500xf32>
    %c0_1 = arith.constant 0 : index
    %c0_2 = arith.constant 0 : index
    %3 = vector.load %arg2[%c0_1, %c0_2] : memref<500x10xf32, #tpu.memory_space<vmem>>, vector<500x10xf32>
    %cst_3 = arith.constant dense<0.000000e+00> : vector<4x10xf32>
    %4 = tpu.matmul %2, %3, %cst_3 {dimension_numbers = #tpu.dot_dimension_numbers<[1], [0], [0], [1], [0, 0, 1, 1], [], []>} : vector<4x500xf32>, vector<500x10xf32>, vector<4x10xf32> -> vector<4x10xf32>
    %c0_4 = arith.constant 0 : index
    %c0_5 = arith.constant 0 : index
    %5 = vector.load %arg3[%c0_4, %c0_5] : memref<1x10xf32, #tpu.memory_space<vmem>>, vector<1x10xf32>
    %6 = vector.broadcast %5 : vector<1x10xf32> to vector<4x10xf32>
    %7 = arith.addf %4, %6 : vector<4x10xf32>
    %c0_6 = arith.constant 0 : index
    %c0_7 = arith.constant 0 : index
    %8 = vector.load %arg4[%c0_6, %c0_7] : memref<4x10xf32, #tpu.memory_space<vmem>>, vector<4x10xf32>
    tpu.vector_store %arg4[%c0_6, %c0_7], %7 {strides = array<i32>} : memref<4x10xf32, #tpu.memory_space<vmem>>, vector<4x10xf32>,
    return
  }
  func.func @transform_0(%arg0: i32) -> (i32, i32) {
    %c0_i32 = arith.constant 0 : i32
    %c0_i32_0 = arith.constant 0 : i32
    return %arg0, %c0_i32 : i32, i32
  }
  func.func @transform_1(%arg0: i32) -> (i32, i32) {
    %c0_i32 = arith.constant 0 : i32
    %c0_i32_0 = arith.constant 0 : i32
    %c0_i32_1 = arith.constant 0 : i32
    return %c0_i32, %c0_i32_0 : i32, i32
  }
  func.func @transform_2(%arg0: i32) -> (i32, i32) {
    %c0_i32 = arith.constant 0 : i32
    %c0_i32_0 = arith.constant 0 : i32
    %c0_i32_1 = arith.constant 0 : i32
    return %c0_i32, %c0_i32_0 : i32, i32
  }
  func.func @transform_3(%arg0: i32) -> (i32, i32) {
    %c0_i32 = arith.constant 0 : i32
    %c0_i32_0 = arith.constant 0 : i32
    return %arg0, %c0_i32 : i32, i32
  }
}

</mosaic_0001>

<bundles_post_ra>
// kernel: tpu_custom_call.1
= control target key start
LH: loop header
LB: loop body
LE: loop exit
PB: predicated region body
PF: predicated region fallthrough
CT: control target
= control target key end

     0   :  { %vm101_vm0 = vcmask 1043456   ;;  %s455_s0 = inlined_call_operand.vmem [shape: f32[4,500], index: 0, kind: input, shape index: {}]   ;;  %s456_s1 = inlined_call_operand.vmem [shape: f32[500,10], index: 1, kind: input, shape index: {}]   ;;  %s457_s2 = inlined_call_operand.vmem [shape: f32[1,10], index: 2, kind: input, shape index: {}]   ;;  %s458_s3 = inlined_call_operand.hbm [shape: f32[4,10], index: 3, kind: output, shape index: {}]  }
   0x1   :  { %v66_v0 = vld [vmem:[%s456_s1 + $0x178] sm:$0xff]  ;;  %v65_v2 = vld [vmem:[%s456_s1 + $0x170] sm:$0xff]  ;;  %v64_v5 = vld [vmem:[%s456_s1 + $0x168] sm:$0xff] }
   0x2   :  { %v34_v1 = vld [vmem:[%s456_s1 + $0x78] sm:$0xff]  ;;  %145 = vmatpush.msra.mxu2 %v66_v0  ;;  %v33_v3 = vld [vmem:[%s456_s1 + $0x70] sm:$0xff]  ;;  %v32_v7 = vld [vmem:[%s456_s1 + $0x68] sm:$0xff] }
   0x3   :  { %105 = vmatpush.msra.mxu0 %v34_v1  ;;  %v50_v4 = vld [vmem:[%s456_s1 + $0xf8] sm:$0xff]  ;;  %v81_v6 = vld [vmem:[%s456_s1 + $0x1f0] sm:$0xf]  ;;  %v80_v9 = vld [vmem:[%s456_s1 + $0x1e8] sm:$0xff] }
   0x4   :  { %125 = vmatpush.msra.mxu1 %v50_v4  ;;  %v49_v8 = vld [vmem:[%s456_s1 + $0xf0] sm:$0xff]  ;;  %146 = vmatpush.msra.mxu2 %v65_v2  ;;  %v63_v10 = vld [vmem:[%s456_s1 + $0x160] sm:$0xff]  ;;  %v48_v12 = vld [vmem:[%s456_s1 + $0xe8] sm:$0xff] }
   0x5   :  { %106 = vmatpush.msra.mxu0 %v33_v3  ;;  %203 = vmatpush.msk.msra.mxu3 %vm101_vm0, %v81_v6  ;;  %v31_v11 = vld [vmem:[%s456_s1 + $0x60] sm:$0xff]  ;;  %v62_v15 = vld [vmem:[%s456_s1 + $0x158] sm:$0xff]  ;;  %v61_v19 = vld [vmem:[%s456_s1 + $0x150] sm:$0xff] }
   0x6   :  { %126 = vmatpush.msra.mxu1 %v49_v8  ;;  %147 = vmatpush.msra.mxu2 %v64_v5  ;;  %v79_v13 = vld [vmem:[%s456_s1 + $0x1e0] sm:$0xff]  ;;  %v30_v16 = vld [vmem:[%s456_s1 + $0x58] sm:$0xff]  ;;  %v29_v20 = vld [vmem:[%s456_s1 + $0x50] sm:$0xff] }
   0x7   :  { %107 = vmatpush.msra.mxu0 %v32_v7  ;;  %v47_v14 = vld [vmem:[%s456_s1 + $0xe0] sm:$0xff]  ;;  %167 = vmatpush.msra.mxu3 %v80_v9  ;;  %v78_v17 = vld [vmem:[%s456_s1 + $0x1d8] sm:$0xff]  ;;  %v77_v21 = vld [vmem:[%s456_s1 + $0x1d0] sm:$0xff] }
   0x8   :  { %127 = vmatpush.msra.mxu1 %v48_v12  ;;  %148 = vmatpush.msra.mxu2 %v63_v10  ;;  %v46_v18 = vld [vmem:[%s456_s1 + $0xd8] sm:$0xff]  ;;  %v45_v22 = vld [vmem:[%s456_s1 + $0xd0] sm:$0xff]  ;;  %v60_v23 = vld [vmem:[%s456_s1 + $0x148] sm:$0xff] }
   0x9   :  { %108 = vmatpush.msra.mxu0 %v31_v11  ;;  %168 = vmatpush.msra.mxu3 %v79_v13  ;;  %v28_v24 = vld [vmem:[%s456_s1 + $0x48] sm:$0xff]  ;;  %v59_v27 = vld [vmem:[%s456_s1 + $0x140] sm:$0xff]  ;;  %v58_v31 = vld [vmem:[%s456_s1 + $0x138] sm:$0xff] }
   0xa   :  { %128 = vmatpush.msra.mxu1 %v47_v14  ;;  %149 = vmatpush.msra.mxu2 %v62_v15  ;;  %v76_v25 = vld [vmem:[%s456_s1 + $0x1c8] sm:$0xff]  ;;  %v27_v28 = vld [vmem:[%s456_s1 + $0x40] sm:$0xff]  ;;  %v26_v32 = vld [vmem:[%s456_s1 + $0x38] sm:$0xff] }
   0xb   :  { %109 = vmatpush.msra.mxu0 %v30_v16  ;;  %169 = vmatpush.msra.mxu3 %v78_v17  ;;  %v44_v26 = vld [vmem:[%s456_s1 + $0xc8] sm:$0xff]  ;;  %v75_v29 = vld [vmem:[%s456_s1 + $0x1c0] sm:$0xff]  ;;  %v74_v33 = vld [vmem:[%s456_s1 + $0x1b8] sm:$0xff] }
   0xc   :  { %129 = vmatpush.msra.mxu1 %v46_v18  ;;  %150 = vmatpush.msra.mxu2 %v61_v19  ;;  %v43_v30 = vld [vmem:[%s456_s1 + $0xc0] sm:$0xff]  ;;  %v42_v34 = vld [vmem:[%s456_s1 + $0xb8] sm:$0xff]  ;;  %v57_v35 = vld [vmem:[%s456_s1 + $0x130] sm:$0xff] }
   0xd   :  { %110 = vmatpush.msra.mxu0 %v29_v20  ;;  %170 = vmatpush.msra.mxu3 %v77_v21  ;;  %v25_v36 = vld [vmem:[%s456_s1 + $0x30] sm:$0xff]  ;;  %v56_v39 = vld [vmem:[%s456_s1 + $0x128] sm:$0xff]  ;;  %v55_v44 = vld [vmem:[%s456_s1 + $0x120] sm:$0xff] }
   0xe   :  { %130 = vmatpush.msra.mxu1 %v45_v22  ;;  %151 = vmatpush.msra.mxu2 %v60_v23  ;;  %v73_v37 = vld [vmem:[%s456_s1 + $0x1b0] sm:$0xff]  ;;  %v24_v40 = vld [vmem:[%s456_s1 + $0x28] sm:$0xff]  ;;  %v23_v45 = vld [vmem:[%s456_s1 + $0x20] sm:$0xff] }
   0xf   :  { %111 = vmatpush.msra.mxu0 %v28_v24  ;;  %171 = vmatpush.msra.mxu3 %v76_v25  ;;  %v41_v38 = vld [vmem:[%s456_s1 + $0xb0] sm:$0xff]  ;;  %v72_v41 = vld [vmem:[%s456_s1 + $0x1a8] sm:$0xff]  ;;  %v71_v46 = vld [vmem:[%s456_s1 + $0x1a0] sm:$0xff] }
  0x10   :  { %131 = vmatpush.msra.mxu1 %v44_v26  ;;  %152 = vmatpush.msra.mxu2 %v59_v27  ;;  %v40_v42 = vld [vmem:[%s456_s1 + $0xa8] sm:$0xff]  ;;  %v39_v48 = vld [vmem:[%s456_s1 + $0xa0] sm:$0xff]  ;;  %v54_v50 = vld [vmem:[%s456_s1 + $0x118] sm:$0xff] }
  0x11   :  { %112 = vmatpush.msra.mxu0 %v27_v28  ;;  %172 = vmatpush.msra.mxu3 %v75_v29  ;;  %v16_v43 = vld [vmem:[%s455_s0 + $0x8] sm:$0xff]  ;;  %v15_v49 = vld [vmem:[%s455_s0] sm:$0xff]  ;;  %v22_v51 = vld [vmem:[%s456_s1 + $0x18] sm:$0xff] }
  0x12   :  { %132 = vmatpush.msra.mxu1 %v43_v30  ;;  %153 = vmatpush.msra.mxu2 %v58_v31  ;;  %v18_v47 = vmax.f32 %v16_v43, 0.0  ;;  %v17_v52 = vmax.f32 %v15_v49, 0.0  ;;  %v70_v53 = vld [vmem:[%s456_s1 + $0x198] sm:$0xff] }
  0x13   :  { %113 = vmatpush.msra.mxu0 %v26_v32  ;;  %173 = vmatpush.msra.mxu3 %v74_v33  ;;  %v38_v54 = vld [vmem:[%s456_s1 + $0x98] sm:$0xff] }
  0x14   :  { %133 = vmatpush.msra.mxu1 %v42_v34  ;;  %154 = vmatpush.msra.mxu2 %v57_v35  ;;  %90 = vst [vmem:[#allocation1 + $0x10] ss:$2 sm:$0xff] %v18_v47 }
  0x15   :  { %114 = vmatpush.msra.mxu0 %v25_v36  ;;  %174 = vmatpush.msra.mxu3 %v73_v37 }
  0x16   :  { %134 = vmatpush.msra.mxu1 %v41_v38  ;;  %155 = vmatpush.msra.mxu2 %v56_v39 }
  0x17   :  { %115 = vmatpush.msra.mxu0 %v24_v40  ;;  %175 = vmatpush.msra.mxu3 %v72_v41 }
  0x18   :  { %135 = vmatpush.msra.mxu1 %v40_v42  ;;  %156 = vmatpush.msra.mxu2 %v55_v44 }
  0x19   :  { %116 = vmatpush.msra.mxu0 %v23_v45 }
  0x1a   :  { %8 = vsyncpa [#allocation3], 0  ;;  %176 = vmatpush.msra.mxu3 %v71_v46  ;;  %136 = vmatpush.msra.mxu1 %v39_v48  ;;  %v53_v55 = vld [vmem:[%s456_s1 + $0x110] sm:$0xff]  ;;  %88 = vst [vmem:[#allocation1] ss:$2 sm:$0xff] %v17_v52  ;;  %v52_v59 = vld [vmem:[%s456_s1 + $0x108] sm:$0xff] }
  0x1b   :  { %v21_v56 = vld [vmem:[%s456_s1 + $0x10] sm:$0xff]  ;;  %157 = vmatpush.msra.mxu2 %v54_v50  ;;  %117 = vmatpush.msra.mxu0 %v22_v51  ;;  %v20_v60 = vld [vmem:[%s456_s1 + $0x8] sm:$0xff]  ;;  %v51_v63 = vld [vmem:[%s456_s1 + $0x100] sm:$0xff]  ;;  %vm98_vm1 = vcmask 949248   ;;  %s233_s8 = smov [#allocation2]   ;;  %s194_s10 = sshll.u32 %s458_s3, 4  ;;  %s195_s10 = int_to_ptr.hbm [resolvable:$true] %s194_s10 }
  0x1c   :  { %v69_v57 = vld [vmem:[%s456_s1 + $0x190] sm:$0xff]  ;;  %177 = vmatpush.msra.mxu3 %v70_v53  ;;  %137 = vmatpush.msra.mxu1 %v38_v54  ;;  %v68_v61 = vld [vmem:[%s456_s1 + $0x188] sm:$0xff]  ;;  %v19_v0 = vld [vmem:[%s456_s1] sm:$0xff]  ;;  %s192_s0 = sshll.u32 %s233_s8, 4  ;;  %vm185_vm2 = vcmask 76800   ;;  %s193_s0 = int_to_ptr.vmem [resolvable:$true] %s192_s0 }
  0x1d   :  { %v37_v58 = vld [vmem:[%s456_s1 + $0x90] sm:$0xff]  ;;  %158 = vmatpush.msra.mxu2 %v53_v55  ;;  %118 = vmatpush.msra.mxu0 %v21_v56  ;;  %v36_v62 = vld [vmem:[%s456_s1 + $0x88] sm:$0xff]  ;;  %v67_v2 = vld [vmem:[%s456_s1 + $0x180] sm:$0xff] }
  0x1e   :  { %178 = vmatpush.msra.mxu3 %v69_v57  ;;  %138 = vmatpush.msra.mxu1 %v37_v58  ;;  %v93_v1 = vld.sshfl [vmem:[#allocation1 + $0x10] sm:$0xff pattern:$0x75316420]  ;;  %v94_v3 = vld.sshfl [vmem:[#allocation1 + $0x18] sm:$0xff pattern:$0x75316420] }
  0x1f   :  { %159 = vmatpush.msra.mxu2 %v52_v59  ;;  %119 = vmatpush.msra.mxu0 %v20_v60  ;;  %v35_v5 = vld [vmem:[%s456_s1 + $0x80] sm:$0xff] }
  0x20   :  { %179 = vmatpush.msra.mxu3 %v68_v61  ;;  %139 = vmatpush.msra.mxu1 %v36_v62  ;;  %v206_v7 = vld [vmem:[%s457_s2] ss:$0 sm:$0xff] }
  0x21   :  { %160 = vmatpush.msra.mxu2 %v51_v63  ;;  %120 = vmatpush.msra.mxu0 %v19_v0  ;;  %v91_v4 = vld.sshfl [vmem:[#allocation1] sm:$0xff pattern:$0x75316420]  ;;  %v92_v6 = vld.sshfl [vmem:[#allocation1 + $0x8] sm:$0xff pattern:$0x75316420] }
  0x22   :  { %161 = vmatmul.f32.vlgmr.msra.gmra.mxu2 %v93_v1  ;;  %180 = vmatpush.msra.mxu3 %v67_v2 }
  0x23   :  { %121 = vmatmul.f32.vlgmr.msra.gmra.mxu0 %v91_v4  ;;  %204 = vmatmul.msk.f32.vlgmr.msra.gmra.mxu3 %vm98_vm1, %v94_v3 }
  0x24   :  { %140 = vmatpush.msra.mxu1 %v35_v5 }
  0x25   :  { %141 = vmatmul.f32.vlgmr.msra.gmra.mxu1 %v92_v6 }
  0xa0   :  { %v122_v8 = vpop.f32.mrf.mxu0 }
  0xa1   :  { %v123_v9 = vadd.f32 %v206_v7, %v122_v8 }
  0xa2   :  { %v142_v10 = vpop.f32.mrf.mxu1 }
  0xa3   :  { %v143_v11 = vadd.f32 %v142_v10, %v123_v9 }
  0xa5   :  { %v162_v12 = vpop.f32.mrf.mxu2 }
  0xa6   :  { %v163_v13 = vadd.f32 %v162_v12, %v143_v11  ;;  %v182_v14 = vpop.f32.mrf.mxu3 }
  0xa8   :  { %v183_v15 = vadd.f32 %v182_v14, %v163_v13 }
  0xaa   :  { %186 = vst.msk [vmem:[#allocation2] sm:$0xf] %vm185_vm2, %v183_v15 }
  0xab   :  { %197 = dma.vmem_to_hbm [thread:$0]  %s193_s0, 64, %s195_s10, [#allocation3]  }
  0xac   :  { %231 = dma.done.wait [#allocation3], 64  }
  0xad   :  { %232 = vsyncadd [#allocation3], 4294967232 }
  0xae   :  { %202 = vsyncpa [#allocation3], 1 }

</bundles_post_ra>
